<compile_context>
chip_gen: v7x
topology: tpu7x:2x2x1
jax: 0.10.0
libtpu: 0.0.40
codegen_flags: <defaults>
</compile_context>

<pallas_src>
import functools

import numpy as np
import jax
import jax.numpy as jnp
from jax import lax
from jax.experimental import pallas as pl
from jax.experimental.pallas import tpu as pltpu


# ---------------------------------------------------------------------------
# Generation-aware sizing helpers
# ---------------------------------------------------------------------------
def _physical_vmem_bytes():
    """Per-core physical VMEM (128 MiB v5e/v6e, 64 MiB v7x); conservative fallback."""
    try:
        cap = int(getattr(pltpu.get_tpu_info(), "vmem_capacity_bytes", 0))
        if cap > 0:
            return cap
    except Exception:
        pass
    return 64 << 20


def _vmem_limit(nbytes, phys):
    """Request the real footprint (+4 MiB headroom), floored at 16 MiB so small
    problems keep full pipelining depth, capped below physical VMEM so the larger
    budgets of v5e/v6e are used without over-subscribing v7x."""
    want = int(nbytes) + (4 << 20)
    hard_cap = int(phys) - (8 << 20)
    return int(min(max(want, 16 << 20), hard_cap))


def _pick_dtile(D, rows, phys):
    """Lane-axis tile: the largest multiple-of-128 divisor of D whose (rows, dtile)
    working set fits comfortably in VMEM (keeps 256-wide v6e/v7x MXU lanes full and
    the output stores lane-dense); full D when D is small / not 128-divisible
    (a block equal to the full dim is always legal)."""
    if D % 128 != 0:
        return D
    budget = max(int(phys) // 4, 8 << 20)
    for cand in range(D, 127, -128):
        if D % cand == 0 and (3 + 4 + 1) * rows * cand * 4 <= budget:
            return cand
    return 128


def _pick_row_tile(L, max_pad):
    """Output-row tile for the banded pooling: 128 when the band half-width fits in
    one neighbour tile and skipping off-band tiles actually saves MXU work."""
    if L % 128 == 0 and L >= 512 and max_pad <= 128:
        return 128
    return L


# ---------------------------------------------------------------------------
# Phase 1: per-batch |rfft| spectrum (bf16 DFT matmul, argmax-only path)
# ---------------------------------------------------------------------------
def _spectrum_kernel(dft_ref, x_ref, spec_ref, acc_ref, *, Kp):
    d = pl.program_id(1)

    @pl.when(d == 0)
    def _():
        acc_ref[...] = jnp.zeros_like(acc_ref)

    # bf16 operands are fine: the spectrum only feeds an argmax (well-separated
    # peak assumption); accumulation stays f32.
    xb = x_ref[...].astype(jnp.bfloat16)                                # (L, dtile)
    y = jnp.dot(dft_ref[...], xb, preferred_element_type=jnp.float32)   # (2Kp, dtile)
    re = y[:Kp, :]
    im = y[Kp:, :]
    acc_ref[...] += jnp.sqrt(re * re + im * im)                         # (Kp, dtile)

    @pl.when(d == pl.num_programs(1) - 1)
    def _():
        # single deferred cross-lane reduction; the mean over B*D is a positive
        # scale of this sum, so the downstream argmax is unchanged.
        spec_ref[...] = jnp.sum(acc_ref[...], axis=1, keepdims=True)    # (Kp, 1)


# ---------------------------------------------------------------------------
# Phase 2: banded average pooling (trend) + seasonal = x - trend
# ---------------------------------------------------------------------------
def _band_delta(kb, n_band):
    if n_band == 1:
        return 0
    # visit order per output tile i:  i+1, i-1, i  (center last, so the finalize
    # step sees the center x tile directly in x_ref -- no stash scratch needed)
    return jnp.where(kb == 0, 1, kb - 2)


def _pool_kernel(pad_ref, x_ref, seasonal_ref, trend_ref, acc_ref, *,
                 L, TL, n_l, n_band):
    i = pl.program_id(1)
    kb = pl.program_id(3)
    pad = pad_ref[0]

    @pl.when(kb == 0)
    def _():
        acc_ref[...] = jnp.zeros_like(acc_ref)

    delta = _band_delta(kb, n_band)
    kblk = i + delta                                   # unclamped input row-tile
    valid = jnp.logical_and(kblk >= 0, kblk < n_l)

    @pl.when(valid)
    def _():
        # 0/1 band weights for this (output tile, input tile) pair, built from the
        # scalar pad:  W[p, q] = 1  iff  |(i*TL + p) - (kblk*TL + q)| <= pad.
        pp = lax.broadcasted_iota(jnp.int32, (TL, TL), 0)
        qq = lax.broadcasted_iota(jnp.int32, (TL, TL), 1)
        rel = pp - qq - delta * TL
        w = (jnp.abs(rel) <= pad).astype(jnp.float32)
        x = x_ref[...].astype(jnp.float32)
        # explicit full-f32 MXU precision (do not rely on the default)
        acc_ref[...] += jnp.dot(w, x, preferred_element_type=jnp.float32,
                                precision=lax.Precision.HIGHEST)

    @pl.when(kb == n_band - 1)
    def _():
        # analytic tap counts (count_include_pad=False), reciprocal-multiply
        t = i * TL + lax.broadcasted_iota(jnp.int32, (TL, 1), 0)
        lo = jnp.maximum(t - pad, 0)
        hi = jnp.minimum(t + pad, L - 1)
        inv_count = 1.0 / (hi - lo + 1).astype(jnp.float32)             # (TL, 1)
        trend = acc_ref[...] * inv_count
        xc = x_ref[...].astype(jnp.float32)        # center tile (delta == 0 here)
        trend_ref[...] = trend.astype(trend_ref.dtype)
        seasonal_ref[...] = (xc - trend).astype(seasonal_ref.dtype)


# ---------------------------------------------------------------------------
# Wrapper
# ---------------------------------------------------------------------------
def adaptive_series_decomposition(x, min_kernel=5, max_kernel=51):
    """x: (B, L, D) float -> (seasonal, trend), each (B, L, D)."""
    B, L, D = x.shape
    K = L // 2 + 1
    Kp = ((K + 7) // 8) * 8          # pad rfft bins so the re/im split is sublane-aligned
    phys = _physical_vmem_bytes()

    # ---------------- phase 1: per-batch spectrum ----------------
    dtile1 = _pick_dtile(D, L, phys)
    n_d1 = D // dtile1

    # stacked [cos; -sin] DFT operand (2*Kp, L): one matmul instead of two
    k = np.arange(K, dtype=np.float64)[:, None]
    ll = np.arange(L, dtype=np.float64)[None, :]
    ang = 2.0 * np.pi * k * ll / L
    dft_np = np.zeros((2 * Kp, L), dtype=np.float32)
    dft_np[:K, :] = np.cos(ang)
    dft_np[Kp:Kp + K, :] = -np.sin(ang)      # sign irrelevant for |fft|
    dft = jnp.asarray(dft_np, dtype=jnp.bfloat16)
    # TODO(synk): for very long L (DFT operand ~ 2*L^2 bytes) tile the DFT contraction.

    vmem1 = _vmem_limit(
        2 * (2 * Kp * L * 2)            # dft (bf16, double-buffered)
        + 2 * (L * dtile1 * 4)          # x blocks
        + Kp * dtile1 * 4               # accumulator scratch
        + 4 * Kp * dtile1 * 4           # matmul result + |.| temporaries
        + 2 * Kp * 4,                   # per-batch spectrum output
        phys)

    partial_spec = pl.pallas_call(
        functools.partial(_spectrum_kernel, Kp=Kp),
        out_shape=jax.ShapeDtypeStruct((B, Kp, 1), jnp.float32),
        grid=(B, n_d1),
        in_specs=[pl.BlockSpec((2 * Kp, L), lambda b, d: (0, 0)),
                  pl.BlockSpec((None, L, dtile1), lambda b, d: (b, 0, d))],
        out_specs=pl.BlockSpec((None, Kp, 1), lambda b, d: (b, 0, 0)),
        scratch_shapes=[pltpu.VMEM((Kp, dtile1), jnp.float32)],
        compiler_params=pltpu.CompilerParams(
            dimension_semantics=("parallel", "arbitrary"),
            vmem_limit_bytes=vmem1),
    )(dft, x)

    # ----- scalar peak -> period -> pad (tiny (B, Kp) reduce; plain JAX glue) -----
    spectrum = jnp.sum(partial_spec[:, :, 0], axis=0)                    # (Kp,)
    kidx = jnp.arange(Kp, dtype=jnp.int32)
    masked = jnp.where((kidx >= 1) & (kidx < K), spectrum, -jnp.inf)     # drop DC + pad bins
    peak = jnp.argmax(masked).astype(jnp.int32)        # first max (torch tie-break)
    period = jnp.int32(L) // jnp.maximum(peak, 1)      # exact integer division
    period = jnp.clip(period, min_kernel, max_kernel)
    period = jnp.where(period % 2 == 0, period + 1, period)
    pad = (period // 2).astype(jnp.int32).reshape(1)   # SMEM scalar for phase 2

    # ---------------- phase 2: banded pooling ----------------
    max_pad = (max_kernel + 1) // 2
    TL = _pick_row_tile(L, max_pad)
    n_l = L // TL
    n_band = 3 if n_l > 1 else 1
    dtile2 = _pick_dtile(D, TL, phys)
    n_d2 = D // dtile2
    n_buf_x = 3 if n_band == 3 else 2

    vmem2 = _vmem_limit(
        n_buf_x * (TL * dtile2 * 4)     # x input buffers
        + 2 * 2 * (TL * dtile2 * 4)     # seasonal + trend outputs (double-buffered)
        + TL * dtile2 * 4               # accumulator scratch
        + 4 * TL * TL * 4,              # band-weight temporaries
        phys)

    def x_index(b, i, d, kb):
        blk = i + _band_delta(kb, n_band)
        return (b, jnp.minimum(jnp.maximum(blk, 0), n_l - 1), d)

    def out_index(b, i, d, kb):
        return (b, i, d)

    x_spec = pl.BlockSpec((None, TL, dtile2), x_index)
    if n_band == 3:
        # banded regime is memory-bound: deeper buffering hides the x DMA stream
        x_spec = pl.BlockSpec((None, TL, dtile2), x_index,
                              pipeline_mode=pl.Buffered(3))

    # TODO(synk): for very small L*D, pack several batches into one block to
    # amortize the ~0.35 us per-grid-step overhead.
    seasonal, trend = pl.pallas_call(
        functools.partial(_pool_kernel, L=L, TL=TL, n_l=n_l, n_band=n_band),
        out_shape=(jax.ShapeDtypeStruct((B, L, D), x.dtype),
                   jax.ShapeDtypeStruct((B, L, D), x.dtype)),
        grid=(B, n_l, n_d2, n_band),
        in_specs=[pl.BlockSpec(memory_space=pltpu.MemorySpace.SMEM),
                  x_spec],
        out_specs=(pl.BlockSpec((None, TL, dtile2), out_index),
                   pl.BlockSpec((None, TL, dtile2), out_index)),
        scratch_shapes=[pltpu.VMEM((TL, dtile2), jnp.float32)],
        compiler_params=pltpu.CompilerParams(
            dimension_semantics=("parallel", "parallel", "parallel", "arbitrary"),
            vmem_limit_bytes=vmem2),
    )(pad, x)
    return seasonal, trend


# ---------------------------------------------------------------------------
# Reference + test
# ---------------------------------------------------------------------------
def _reference(x, min_kernel=5, max_kernel=51):
    """Pure numpy reference mirroring the PyTorch forward (count_include_pad=False)."""
    xn = np.asarray(x, dtype=np.float32)
    B, L, D = xn.shape
    fft = np.fft.rfft(xn, axis=1)
    spectrum = np.abs(fft).mean(axis=(0, 2))
    peak_idx = int(np.argmax(spectrum[1:])) + 1
    period = max(min_kernel, min(max_kernel, int(L / peak_idx)))
    if period % 2 == 0:
        period += 1
    pad = period // 2
    trend = np.zeros_like(xn)
    for t in range(L):
        lo, hi = max(0, t - pad), min(L, t + pad + 1)
        trend[:, t, :] = xn[:, lo:hi, :].mean(axis=1)
    return xn - trend, trend


if __name__ == "__main__":
    B, L, D = 2, 16, 8
    key = jax.random.PRNGKey(0)
    # add a clear periodic component so the spectral peak is well defined
    tgrid = jnp.arange(L, dtype=jnp.float32)[None, :, None]
    x = (jax.random.normal(key, (B, L, D), dtype=jnp.float32)
         + 1.0 * jnp.sin(2.0 * jnp.pi * tgrid * 3.0 / L))

    seasonal, trend = adaptive_series_decomposition(x)
    seasonal = jax.block_until_ready(seasonal)
    trend = jax.block_until_ready(trend)

    seas_np, trend_np = _reference(np.asarray(x))
    np.testing.assert_allclose(np.asarray(trend), trend_np, rtol=1e-4, atol=1e-4)
    np.testing.assert_allclose(np.asarray(seasonal), seas_np, rtol=1e-4, atol=1e-4)

    print("KERNEL_OK")
</pallas_src>

<mosaic_0001>
module attributes {stable_mosaic.version = 11 : i64} {
  func.func @_spectrum_kernel(%arg0: i32, %arg1: i32, %arg2: memref<32x16xbf16, #tpu.memory_space<vmem>>, %arg3: memref<1x16x8xf32, #tpu.memory_space<vmem>>, %arg4: memref<1x16x1xf32, #tpu.memory_space<vmem>>, %arg5: memref<16x8xf32, #tpu.memory_space<vmem>>) attributes {dimension_semantics = [#tpu.dimension_semantics<parallel>, #tpu.dimension_semantics<arbitrary>], iteration_bounds = array<i64: 2, 1>, scalar_prefetch = 0 : i64, scratch_operands = 1 : i64, tpu.core_type = #tpu.core_type<tc>, window_params = [{pipeline_mode = #tpu.pipeline_mode<synchronous>, transform_indices = @transform_0, window_bounds = array<i64: 32, 16>}, {transform_indices = @transform_1, window_bounds = array<i64: 1, 16, 8>}, {transform_indices = @transform_2, window_bounds = array<i64: 1, 16, 1>}]} {
    %c0_i32 = arith.constant 0 : i32
    %0 = arith.cmpi eq, %arg1, %c0_i32 : i32
    %1 = arith.extui %0 : i1 to i32
    %c0_i32_0 = arith.constant 0 : i32
    %2 = arith.cmpi ne, %1, %c0_i32_0 : i32
    scf.if %2 {
      %cst_11 = arith.constant 0.000000e+00 : f32
      %20 = vector.broadcast %cst_11 : f32 to vector<16x8xf32>
      %c0_12 = arith.constant 0 : index
      %c0_13 = arith.constant 0 : index
      %21 = vector.load %arg5[%c0_12, %c0_13] : memref<16x8xf32, #tpu.memory_space<vmem>>, vector<16x8xf32>
      tpu.vector_store %arg5[%c0_12, %c0_13], %20 {strides = array<i32>} : memref<16x8xf32, #tpu.memory_space<vmem>>, vector<16x8xf32>,
    } else {
    }
    %c0 = arith.constant 0 : index
    %c0_1 = arith.constant 0 : index
    %c0_2 = arith.constant 0 : index
    %3 = vector.load %arg3[%c0, %c0_1, %c0_2] : memref<1x16x8xf32, #tpu.memory_space<vmem>>, vector<1x16x8xf32>
    %4 = vector.shape_cast %3 : vector<1x16x8xf32> to vector<16x8xf32>
    %5 = arith.truncf %4 : vector<16x8xf32> to vector<16x8xbf16>
    %c0_3 = arith.constant 0 : index
    %c0_4 = arith.constant 0 : index
    %6 = vector.load %arg2[%c0_3, %c0_4] : memref<32x16xbf16, #tpu.memory_space<vmem>>, vector<32x16xbf16>
    %cst = arith.constant dense<0.000000e+00> : vector<32x8xf32>
    %7 = tpu.matmul %6, %5, %cst {dimension_numbers = #tpu.dot_dimension_numbers<[1], [0], [0], [1], [0, 0, 1, 1], [], []>} : vector<32x16xbf16>, vector<16x8xbf16>, vector<32x8xf32> -> vector<32x8xf32>
    %8 = vector.extract_strided_slice %7 {offsets = [0, 0], sizes = [16, 8], strides = [1, 1]} : vector<32x8xf32> to vector<16x8xf32>
    %9 = vector.extract_strided_slice %7 {offsets = [16, 0], sizes = [16, 8], strides = [1, 1]} : vector<32x8xf32> to vector<16x8xf32>
    %c0_5 = arith.constant 0 : index
    %c0_6 = arith.constant 0 : index
    %10 = vector.load %arg5[%c0_5, %c0_6] : memref<16x8xf32, #tpu.memory_space<vmem>>, vector<16x8xf32>
    %11 = arith.mulf %8, %8 : vector<16x8xf32>
    %12 = arith.mulf %9, %9 : vector<16x8xf32>
    %13 = arith.addf %11, %12 : vector<16x8xf32>
    %14 = math.sqrt %13 : vector<16x8xf32>
    %15 = arith.addf %10, %14 : vector<16x8xf32>
    %c0_7 = arith.constant 0 : index
    %c0_8 = arith.constant 0 : index
    %16 = vector.load %arg5[%c0_7, %c0_8] : memref<16x8xf32, #tpu.memory_space<vmem>>, vector<16x8xf32>
    tpu.vector_store %arg5[%c0_7, %c0_8], %15 {strides = array<i32>} : memref<16x8xf32, #tpu.memory_space<vmem>>, vector<16x8xf32>,
    %c0_i32_9 = arith.constant 0 : i32
    %17 = arith.cmpi eq, %arg1, %c0_i32_9 : i32
    %18 = arith.extui %17 : i1 to i32
    %c0_i32_10 = arith.constant 0 : i32
    %19 = arith.cmpi ne, %18, %c0_i32_10 : i32
    scf.if %19 {
      %c0_11 = arith.constant 0 : index
      %c0_12 = arith.constant 0 : index
      %20 = vector.load %arg5[%c0_11, %c0_12] : memref<16x8xf32, #tpu.memory_space<vmem>>, vector<16x8xf32>
      %cst_13 = arith.constant dense<0.000000e+00> : vector<16xf32>
      %21 = vector.multi_reduction <add>, %20, %cst_13 [1] : vector<16x8xf32> to vector<16xf32>
      %22 = vector.shape_cast %21 : vector<16xf32> to vector<16x1xf32>
      %c0_14 = arith.constant 0 : index
      %c0_15 = arith.constant 0 : index
      %c0_16 = arith.constant 0 : index
      %23 = vector.load %arg4[%c0_14, %c0_15, %c0_16] : memref<1x16x1xf32, #tpu.memory_space<vmem>>, vector<1x16x1xf32>
      %24 = vector.shape_cast %23 : vector<1x16x1xf32> to vector<16x1xf32>
      %25 = vector.shape_cast %22 : vector<16x1xf32> to vector<1x16x1xf32>
      tpu.vector_store %arg4[%c0_14, %c0_15, %c0_16], %25 {strides = array<i32>} : memref<1x16x1xf32, #tpu.memory_space<vmem>>, vector<1x16x1xf32>,
    } else {
    }
    return
  }
  func.func @transform_0(%arg0: i32, %arg1: i32) -> (i32, i32) {
    %c0_i32 = arith.constant 0 : i32
    %c0_i32_0 = arith.constant 0 : i32
    %c0_i32_1 = arith.constant 0 : i32
    return %c0_i32, %c0_i32_0 : i32, i32
  }
  func.func @transform_1(%arg0: i32, %arg1: i32) -> (i32, i32, i32) {
    %c0_i32 = arith.constant 0 : i32
    %c0_i32_0 = arith.constant 0 : i32
    return %arg0, %c0_i32, %arg1 : i32, i32, i32
  }
  func.func @transform_2(%arg0: i32, %arg1: i32) -> (i32, i32, i32) {
    %c0_i32 = arith.constant 0 : i32
    %c0_i32_0 = arith.constant 0 : i32
    %c0_i32_1 = arith.constant 0 : i32
    return %arg0, %c0_i32, %c0_i32_0 : i32, i32, i32
  }
}

</mosaic_0001>

<bundles_post_ra>
// kernel: tpu_custom_call.1
= control target key start
LH: loop header
LB: loop body
LE: loop exit
PB: predicated region body
PF: predicated region fallthrough
CT: control target
= control target key end

     0   :  { %s455_s9 = smov 0   ;;  %s457_s10 = smov 0   ;;  %s507_s0 = inlined_call_operand.vmem [shape: bf16[32,16], index: 0, kind: input, shape index: {}]   ;;  %s508_s1 = inlined_call_operand.vmem [shape: f32[2,16,8], index: 1, kind: input, shape index: {}]   ;;  %s509_s2 = inlined_call_operand.vmem [shape: f32[2,16,1], index: 2, kind: output, shape index: {}]  }
   0x1   :  { %s459_s11 = smov 0  }
   0x2 LB: > { %s24_s12 = sadd.s32 1, %s433_s10  ;;  %p362_p0 = scmp.ge.s32.totalorder %s437_s11, 1  ;;  %s437_s11 = sphi %s459_s11, %s12_s11   ;;  %s433_s10 = sphi %s457_s10, %s511_s10   ;;  %s429_s9 = sphi %s455_s9, %s510_s9  }
   0x3   : > { %p26_p1 = scmp.ge.s32.totalorder %s24_s12, 2  ;;  %p129_p2 = scmp.lt.s32.totalorder %s437_s11, 3 }
   0x5   : > { %s513_s12 = smov (%p26_p1, %s24_s12), 0  ;;  %p130_p3 = pnand %p362_p0, %p129_p2 }
   0x6   : > { %p154_p4 = scmp.lt.s32.totalorder (!%p130_p3), %s429_s9, 1  ;;  %v409_v0 = vld [vmem:[%s507_s0] sm:$0xff] (!%p130_p3)   ;;  %vm192_vm0 = vcmask (!%p130_p3), 130048   ;;  %v410_v4 = vld [vmem:[%s507_s0 + $0x8] sm:$0xff] (!%p130_p3)   ;;  %vm172_vm1 = vcmask (!%p130_p3), 64512   ;;  %v439_v5 = vmov (!%p130_p3), 0.0  }
   0x7   : > { %133 = sbr.rel (%p130_p3) target bundleno = 414 (0x19e), region = 28  ;;  %380 = vmatprep.mubr.msk.bf16.mxu0 (!%p130_p3), %vm192_vm0, %v409_v0  ;;  %173 = vst.msk [vmem:[#allocation2] sm:$0xff] (!%p130_p3), %vm172_vm1, %v439_v5  ;;  %174 = vst.msk [vmem:[#allocation2 + $0x8] sm:$0xff] (!%p130_p3), %vm172_vm1, %v439_v5  ;;  %vm286_vm6 = vcmask (!%p130_p3), 7168  }
   0xe   : > { %s515_s9 = smov (!%p154_p4, %s429_s9), 1  ;;  %v248_v19 = vld [vmem:[#allocation2] sm:$0xff]  ;;  %v249_v25 = vld [vmem:[#allocation2 + $0x8] sm:$0xff] }
   0xf   : > { %s373_s15 = sshll.u32 %s515_s9, 4 }
  0x10   : > { %s161_s18 = scalar_lea.vmem %s508_s1, %s373_s15  ;;  %s166_s23 = scalar_lea.vmem %s509_s2, %s373_s15 }
  0x11   : > { %v175_v1 = vld [vmem:[%s161_s18] sm:$0xff]  ;;  %v176_v2 = vld [vmem:[%s161_s18 + $0x8] sm:$0xff] }
  0x12   : > { %v177_v3 = vpack.c.bf16 %v176_v2, %v175_v1 }
  0x14   : > { %378 = vmatprep.subr.bf16.mxu0 %v177_v3 }
  0x15   : > { %379 = vmatpush3.bf16.msra.mxu0 %v177_v3 }
  0x18   : > { %381 = vmatmul.mubr.msk.bf16.vlgmr.msra.gmra.mrb[0].mxu0 %vm192_vm0, %v410_v4 }
  0xeb   : > { %v382_v6 = vpop.f32.mrb[0].mxu0 }
  0xec   : > { %v252_v7 = vmul.f32 %v382_v6, %v382_v6  ;;  %v233_v8 = vpop.f32.mrb[1].mxu0 }
  0xed   : > { %v250_v9 = vmul.f32 %v233_v8, %v233_v8  ;;  %v383_v10 = vpop.f32.mrb[2].mxu0 }
  0xee   : > { %v253_v11 = vmul.f32 %v383_v10, %v383_v10  ;;  %v236_v12 = vpop.f32.mrb[3].mxu0 }
  0xef   : > { %v254_v13 = vadd.f32 %v252_v7, %v250_v9  ;;  %v251_v14 = vmul.f32 %v236_v12, %v236_v12 }
  0xf1   : > { %411 = vrsqrt.f32 %v254_v13  ;;  %v255_v15 = vadd.f32 %v253_v11, %v251_v14  ;;  %vm258_vm2 = vcmp.eq.f32.partialorder %v254_v13, inf  ;;  %v261_v18 = vand.u32 2147483648, %v254_v13 }
  0xf2   : > { %vm260_vm3 = vcmp.eq.f32.partialorder %v254_v13, 0.0 }
  0xf3   : > { %413 = vrsqrt.f32 %v255_v15  ;;  %vm265_vm4 = vcmp.eq.f32.partialorder %v255_v15, inf  ;;  %v268_v24 = vand.u32 2147483648, %v255_v15  ;;  %vm267_vm5 = vcmp.eq.f32.partialorder %v255_v15, 0.0 }
  0xfb   : > { %v412_v16 = vpop.eup %411 }
  0xfc   : > { %v257_v17 = vmul.f32 %v412_v16, %v254_v13 }
  0xfd   : > { %v414_v20 = vpop.eup %413 }
  0xfe   : > { %v259_v21 = vsel %vm258_vm2, %v254_v13, %v257_v17  ;;  %v264_v23 = vmul.f32 %v414_v20, %v255_v15 }
  0xff   : > { %v262_v22 = vsel %vm260_vm3, %v261_v18, %v259_v21 }
 0x100   : > { %v270_v26 = vadd.f32 %v262_v22, %v248_v19  ;;  %v266_v27 = vsel %vm265_vm4, %v255_v15, %v264_v23 }
 0x101   : > { %v269_v28 = vsel %vm267_vm5, %v268_v24, %v266_v27 }
 0x102   : > { %273 = vst.msk [vmem:[#allocation2] sm:$0xff] %vm172_vm1, %v270_v26  ;;  %v271_v29 = vadd.f32 %v269_v28, %v249_v25 }
 0x104   : > { %274 = vst.msk [vmem:[#allocation2 + $0x8] sm:$0xff] %vm172_vm1, %v271_v29 }
 0x109   : > { %v278_v30 = vld [vmem:[#allocation2] sm:$0xff] }
 0x10a   : > { %v280_v31 = vsel %vm172_vm1, %v278_v30, 0.0 }
 0x10b   : > { %281 = vadd.xlane.f32.xlu0 %v280_v31  ;;  %v279_v32 = vld [vmem:[#allocation2 + $0x8] sm:$0xff] }
 0x10c   : > { %v283_v33 = vsel %vm172_vm1, %v279_v32, 0.0 }
 0x10f   : > { %284 = vadd.xlane.f32.xlu0 %v283_v33 }
 0x198   : > { %v282_v34 = vpop.xlane.xlu0 %281 }
 0x199   : > { %287 = vst.msk [vmem:[%s166_s23] sm:$0xff] %vm286_vm6, %v282_v34 }
 0x19c   : > { %v285_v35 = vpop.xlane.xlu0 %284 }
 0x19d   : > { %288 = vst.msk [vmem:[%s166_s23 + $0x8] sm:$0xff] %vm286_vm6, %v285_v35 }
 0x19e PF: > { %s12_s11 = sadd.s32 1, %s437_s11   ;;  %s510_s9 = smov %s433_s10 }
 0x19f   : > { %p9_p5 = scmp.ge.s32.totalorder %s12_s11, 4   ;;  %s511_s10 = smov %s513_s12 }
 0x1a1   :  { %11 = sbr.rel (!%p9_p5) target bundleno = 2 (0x2), region = 66 }

</bundles_post_ra>
